<compile_context>
chip_gen: v6e
topology: v6e:2x2x1
jax: 0.10.0
libtpu: 0.0.40
codegen_flags: <defaults>
</compile_context>

<pallas_src>
import jax
import jax.numpy as jnp
from jax.experimental import pallas as pl
from jax.experimental.pallas import tpu as pltpu


def apinet_kernel(f1_ref, f2_ref, w1a_ref, w1b_ref, b1_ref,
                  w2_ref, b2_ref, wc_ref, bc_ref,
                  out_ref, xm_sc):
    j = pl.program_id(0)
    nj = pl.num_programs(0)

    @pl.when(j == 0)
    def _init():
        xm_sc[...] = jnp.zeros_like(xm_sc)

    # APIComponent.mlp first Linear (column tile j) + ReLU.
    # concat([f1, f2]) @ W1  ==  f1 @ W1[:C] + f2 @ W1[C:]   (W1 pre-split).
    h = (jnp.dot(f1_ref[...], w1a_ref[...], preferred_element_type=jnp.float32)
         + jnp.dot(f2_ref[...], w1b_ref[...], preferred_element_type=jnp.float32)
         + b1_ref[...])
    h = jnp.maximum(h, 0.0)
    # Dropout(0.5): identity in eval mode.

    # Second Linear: accumulate row-tile j of W2 into the resident (B, C) acc.
    xm_sc[...] += jnp.dot(h.astype(jnp.bfloat16), w2_ref[...],
                          preferred_element_type=jnp.float32)

    @pl.when(j == nj - 1)
    def _finalize():
        f1 = f1_ref[...].astype(jnp.float32)
        f2 = f2_ref[...].astype(jnp.float32)
        xm = xm_sc[...] + b2_ref[...]

        # Mutual gating in f32 (VPU/EUP).
        g1 = jax.nn.sigmoid(xm * f1)
        g2 = jax.nn.sigmoid(xm * f2)
        feats = jnp.concatenate(
            [f1 * (1.0 + g1),    # x1_self
             f1 * (1.0 + g2),    # x1_other
             f2 * (1.0 + g2),    # x2_self
             f2 * (1.0 + g1)],   # x2_other
            axis=0)              # (4B, C)

        # Single fused classifier matmul -> one lane-dense (4B, Kpad) slab.
        logits = jnp.dot(feats.astype(jnp.bfloat16), wc_ref[...],
                         preferred_element_type=jnp.float32) + bc_ref[...]
        out_ref[...] = logits


def _vmem_capacity_bytes():
    try:
        return int(pltpu.get_tpu_info().vmem_capacity_bytes)
    except Exception:
        return 64 * 1024 * 1024          # conservative: v7x per-TensorCore


def _default_tn(B, C, kpad):
    """Largest weight-tile width whose double-buffered footprint fits VMEM."""
    budget = int(0.55 * _vmem_capacity_bytes())
    fixed = (2 * (2 * B * C * 2)                          # f1, f2 (bf16)
             + 2 * (C * kpad * 2 + kpad * 4 + C * 4)      # wc, bc, b2
             + 4 * B * C * 4                              # xm scratch (f32)
             + 2 * (4 * B * kpad * 4))                    # output slab (f32)
    candidates = [C] + [t for t in (1024, 512, 256, 128) if t < C and C % t == 0]
    for t in candidates:
        need = fixed + 2 * ((2 * C * t + t * C) * 2 + t * 4)   # w1a, w1b, w2, b1
        if need <= budget:
            return t
    return candidates[-1]


def apinet_forward(x1_nchw, x2_nchw, params, *, tn=None):
    B, C, H, W = x1_nchw.shape
    K = params["wc"].shape[-1]
    kpad = max(128, pl.cdiv(K, 128) * 128)

    # Backbone tail: global average pool (B, C, H, W) -> (B, C), then squeeze.
    # Done in the wrapper so only tiny pooled features cross HBM into the kernel.
    f1 = jnp.mean(x1_nchw, axis=(2, 3)).astype(jnp.bfloat16)
    f2 = jnp.mean(x2_nchw, axis=(2, 3)).astype(jnp.bfloat16)

    if tn is None:
        tn = _default_tn(B, C, kpad)
    assert C % tn == 0 and (tn % 128 == 0 or tn == C), (C, tn)
    nj = C // tn

    # --- wrapper-side weight layout (no compute hoisted) ---
    w1 = params["w1"].astype(jnp.bfloat16)                # (2C, C)

    def col_tiles(w):   # (C, C) -> (nj, C, tn): each column tile is contiguous.
        return jnp.transpose(w.reshape(C, nj, tn), (1, 0, 2))

    w1a = col_tiles(w1[:C])                               # (nj, C, tn)
    w1b = col_tiles(w1[C:])                               # (nj, C, tn)
    w2 = params["w2"].astype(jnp.bfloat16)                # (C, C); row tiles contiguous
    b1 = params["b1"].astype(jnp.float32)                 # (1, C)
    b2 = params["b2"].astype(jnp.float32)                 # (1, C)
    wc = jnp.zeros((C, kpad), jnp.bfloat16).at[:, :K].set(
        params["wc"].astype(jnp.bfloat16))                # (C, Kpad), zero-padded
    bc = jnp.zeros((1, kpad), jnp.float32).at[:, :K].set(
        params["bc"].astype(jnp.float32))                 # (1, Kpad), zero-padded

    # Rough VMEM budget (pipeline double-buffers each block by default).
    vmem_need = (
        2 * (2 * B * C * 2)                               # f1, f2 (bf16)
        + 2 * ((2 * C * tn + tn * C) * 2 + tn * 4)        # w1a, w1b, w2, b1 tiles
        + 2 * (C * kpad * 2 + kpad * 4 + C * 4)           # wc, bc, b2
        + 4 * B * C * 4                                   # xm scratch (f32)
        + 2 * (4 * B * kpad * 4))                         # output slab (f32)
    cap = _vmem_capacity_bytes()
    vmem_limit = int(min(max(2 * vmem_need, 32 * 1024 * 1024), int(0.9 * cap)))

    flops = 2 * B * C * C * 3 + 2 * (4 * B) * C * kpad
    bytes_accessed = (2 * B * C * 2                       # pooled features
                      + (3 * C * C + C * kpad) * 2        # bf16 weights
                      + (2 * C + kpad) * 4                # biases
                      + 4 * B * kpad * 4)                 # output

    grid_spec = pltpu.PrefetchScalarGridSpec(
        num_scalar_prefetch=0,
        grid=(nj,),
        in_specs=[
            pl.BlockSpec((B, C), lambda j: (0, 0)),          # f1 (resident)
            pl.BlockSpec((B, C), lambda j: (0, 0)),          # f2 (resident)
            pl.BlockSpec((None, C, tn), lambda j: (j, 0, 0)),  # w1a tile (contiguous)
            pl.BlockSpec((None, C, tn), lambda j: (j, 0, 0)),  # w1b tile (contiguous)
            pl.BlockSpec((1, tn), lambda j: (0, j)),         # b1 column tile
            pl.BlockSpec((tn, C), lambda j: (j, 0)),         # w2 row tile (contiguous)
            pl.BlockSpec((1, C), lambda j: (0, 0)),          # b2
            pl.BlockSpec((C, kpad), lambda j: (0, 0)),       # wc
            pl.BlockSpec((1, kpad), lambda j: (0, 0)),       # bc
        ],
        out_specs=pl.BlockSpec((4 * B, kpad), lambda j: (0, 0)),
        scratch_shapes=[
            pltpu.VMEM((B, C), jnp.float32),   # xm accumulator
        ],
    )

    out = pl.pallas_call(
        apinet_kernel,
        out_shape=jax.ShapeDtypeStruct((4 * B, kpad), jnp.float32),
        grid_spec=grid_spec,
        compiler_params=pltpu.CompilerParams(
            # xm accumulates over the weight-tile axis -> must be "arbitrary".
            dimension_semantics=("arbitrary",),
            vmem_limit_bytes=vmem_limit,
        ),
        cost_estimate=pl.CostEstimate(
            flops=flops, transcendentals=2 * B * C,
            bytes_accessed=bytes_accessed),
    )(f1, f2, w1a, w1b, b1, w2, b2, wc, bc)

    p1_self = out[0 * B:1 * B, :K]
    p1_other = out[1 * B:2 * B, :K]
    p2_self = out[2 * B:3 * B, :K]
    p2_other = out[3 * B:4 * B, :K]
    return p1_self, p1_other, p2_self, p2_other


def init_params(key, feature_dim, num_classes):
    """Init mimicking nn.Linear defaults (uniform +-1/sqrt(fan_in)); weights stored bf16."""
    ks = jax.random.split(key, 6)

    def linear(kw, kb, fan_in, fan_out):
        bound = 1.0 / jnp.sqrt(jnp.float32(fan_in))
        w = jax.random.uniform(kw, (fan_in, fan_out), jnp.float32, -bound, bound)
        b = jax.random.uniform(kb, (1, fan_out), jnp.float32, -bound, bound)
        return w.astype(jnp.bfloat16), b

    w1, b1 = linear(ks[0], ks[1], 2 * feature_dim, feature_dim)
    w2, b2 = linear(ks[2], ks[3], feature_dim, feature_dim)
    wc, bc = linear(ks[4], ks[5], feature_dim, num_classes)
    return {"w1": w1, "b1": b1, "w2": w2, "b2": b2, "wc": wc, "bc": bc}


def apinet_reference(x1, x2, p):
    """Pure-JAX reference mirroring the kernel's bf16/f32 mixed precision."""
    f32 = lambda a: a.astype(jnp.float32)
    f1b = jnp.mean(x1, axis=(2, 3)).astype(jnp.bfloat16)
    f2b = jnp.mean(x2, axis=(2, 3)).astype(jnp.bfloat16)
    f1, f2 = f32(f1b), f32(f2b)
    w1, w2, wc = f32(p["w1"]), f32(p["w2"]), f32(p["wc"])
    h = jnp.maximum(
        jnp.concatenate([f1, f2], axis=1) @ w1 + p["b1"], 0.0)
    xm = f32(h.astype(jnp.bfloat16)) @ w2 + p["b2"]
    g1 = jax.nn.sigmoid(xm * f1)
    g2 = jax.nn.sigmoid(xm * f2)
    x1s, x1o = f1 * (1.0 + g1), f1 * (1.0 + g2)
    x2s, x2o = f2 * (1.0 + g2), f2 * (1.0 + g1)
    cls = lambda v: f32(v.astype(jnp.bfloat16)) @ wc + p["bc"]
    return cls(x1s), cls(x1o), cls(x2s), cls(x2o)


if __name__ == "__main__":
    # Small stand-in for resnet50's (B, 2048, 7, 7) feature-map tail.
    B, C, H, W = 2, 256, 8, 8
    NUM_CLASSES = 6

    key = jax.random.PRNGKey(0)
    k_x1, k_x2, k_p = jax.random.split(key, 3)
    x1 = jax.random.normal(k_x1, (B, C, H, W), jnp.float32)
    x2 = jax.random.normal(k_x2, (B, C, H, W), jnp.float32)
    params = init_params(k_p, feature_dim=C, num_classes=NUM_CLASSES)

    # tn=128 -> 2 grid steps, exercising the weight-tile streaming/accumulation path.
    outs = apinet_forward(x1, x2, params, tn=128)
    outs = jax.block_until_ready(outs)

    refs = apinet_reference(x1, x2, params)
    for o, r in zip(outs, refs):
        assert o.shape == (B, NUM_CLASSES)
        assert jnp.allclose(o, r, atol=1e-2, rtol=1e-2), float(jnp.max(jnp.abs(o - r)))

    print("KERNEL_OK")
</pallas_src>

<mosaic_0001>
module attributes {stable_mosaic.version = 11 : i64} {
  func.func @apinet_kernel(%arg0: i32, %arg1: memref<2x256xbf16, #tpu.memory_space<vmem>>, %arg2: memref<2x256xbf16, #tpu.memory_space<vmem>>, %arg3: memref<1x256x128xbf16, #tpu.memory_space<vmem>>, %arg4: memref<1x256x128xbf16, #tpu.memory_space<vmem>>, %arg5: memref<1x128xf32, #tpu.memory_space<vmem>>, %arg6: memref<128x256xbf16, #tpu.memory_space<vmem>>, %arg7: memref<1x256xf32, #tpu.memory_space<vmem>>, %arg8: memref<256x128xbf16, #tpu.memory_space<vmem>>, %arg9: memref<1x128xf32, #tpu.memory_space<vmem>>, %arg10: memref<8x128xf32, #tpu.memory_space<vmem>>, %arg11: memref<2x256xf32, #tpu.memory_space<vmem>>) attributes {dimension_semantics = [#tpu.dimension_semantics<arbitrary>], iteration_bounds = array<i64: 2>, scalar_prefetch = 0 : i64, scratch_operands = 1 : i64, tpu.core_type = #tpu.core_type<tc>, window_params = [{pipeline_mode = #tpu.pipeline_mode<synchronous>, transform_indices = @transform_0, window_bounds = array<i64: 2, 256>}, {pipeline_mode = #tpu.pipeline_mode<synchronous>, transform_indices = @transform_1, window_bounds = array<i64: 2, 256>}, {transform_indices = @transform_2, window_bounds = array<i64: 1, 256, 128>}, {transform_indices = @transform_3, window_bounds = array<i64: 1, 256, 128>}, {transform_indices = @transform_4, window_bounds = array<i64: 1, 128>}, {transform_indices = @transform_5, window_bounds = array<i64: 128, 256>}, {pipeline_mode = #tpu.pipeline_mode<synchronous>, transform_indices = @transform_6, window_bounds = array<i64: 1, 256>}, {pipeline_mode = #tpu.pipeline_mode<synchronous>, transform_indices = @transform_7, window_bounds = array<i64: 256, 128>}, {pipeline_mode = #tpu.pipeline_mode<synchronous>, transform_indices = @transform_8, window_bounds = array<i64: 1, 128>}, {pipeline_mode = #tpu.pipeline_mode<synchronous>, transform_indices = @transform_9, window_bounds = array<i64: 8, 128>}]} {
    %c0_i32 = arith.constant 0 : i32
    %0 = arith.cmpi eq, %arg0, %c0_i32 : i32
    %1 = arith.extui %0 : i1 to i32
    %c0_i32_0 = arith.constant 0 : i32
    %2 = arith.cmpi ne, %1, %c0_i32_0 : i32
    scf.if %2 {
      %cst_22 = arith.constant 0.000000e+00 : f32
      %26 = vector.broadcast %cst_22 : f32 to vector<2x256xf32>
      %c0_23 = arith.constant 0 : index
      %c0_24 = arith.constant 0 : index
      %27 = vector.load %arg11[%c0_23, %c0_24] : memref<2x256xf32, #tpu.memory_space<vmem>>, vector<2x256xf32>
      tpu.vector_store %arg11[%c0_23, %c0_24], %26 {strides = array<i32>} : memref<2x256xf32, #tpu.memory_space<vmem>>, vector<2x256xf32>,
    } else {
    }
    %c0 = arith.constant 0 : index
    %c0_1 = arith.constant 0 : index
    %3 = vector.load %arg1[%c0, %c0_1] : memref<2x256xbf16, #tpu.memory_space<vmem>>, vector<2x256xbf16>
    %c0_2 = arith.constant 0 : index
    %c0_3 = arith.constant 0 : index
    %c0_4 = arith.constant 0 : index
    %4 = vector.load %arg3[%c0_2, %c0_3, %c0_4] : memref<1x256x128xbf16, #tpu.memory_space<vmem>>, vector<1x256x128xbf16>
    %5 = vector.shape_cast %4 : vector<1x256x128xbf16> to vector<256x128xbf16>
    %cst = arith.constant dense<0.000000e+00> : vector<2x128xf32>
    %6 = tpu.matmul %3, %5, %cst {dimension_numbers = #tpu.dot_dimension_numbers<[1], [0], [0], [1], [0, 0, 1, 1], [], []>} : vector<2x256xbf16>, vector<256x128xbf16>, vector<2x128xf32> -> vector<2x128xf32>
    %c0_5 = arith.constant 0 : index
    %c0_6 = arith.constant 0 : index
    %7 = vector.load %arg2[%c0_5, %c0_6] : memref<2x256xbf16, #tpu.memory_space<vmem>>, vector<2x256xbf16>
    %c0_7 = arith.constant 0 : index
    %c0_8 = arith.constant 0 : index
    %c0_9 = arith.constant 0 : index
    %8 = vector.load %arg4[%c0_7, %c0_8, %c0_9] : memref<1x256x128xbf16, #tpu.memory_space<vmem>>, vector<1x256x128xbf16>
    %9 = vector.shape_cast %8 : vector<1x256x128xbf16> to vector<256x128xbf16>
    %cst_10 = arith.constant dense<0.000000e+00> : vector<2x128xf32>
    %10 = tpu.matmul %7, %9, %cst_10 {dimension_numbers = #tpu.dot_dimension_numbers<[1], [0], [0], [1], [0, 0, 1, 1], [], []>} : vector<2x256xbf16>, vector<256x128xbf16>, vector<2x128xf32> -> vector<2x128xf32>
    %11 = arith.addf %6, %10 : vector<2x128xf32>
    %c0_11 = arith.constant 0 : index
    %c0_12 = arith.constant 0 : index
    %12 = vector.load %arg5[%c0_11, %c0_12] : memref<1x128xf32, #tpu.memory_space<vmem>>, vector<1x128xf32>
    %13 = vector.broadcast %12 : vector<1x128xf32> to vector<2x128xf32>
    %14 = arith.addf %11, %13 : vector<2x128xf32>
    %cst_13 = arith.constant 0.000000e+00 : f32
    %15 = vector.broadcast %cst_13 : f32 to vector<2x128xf32>
    %16 = arith.maximumf %14, %15 : vector<2x128xf32>
    %c0_14 = arith.constant 0 : index
    %c0_15 = arith.constant 0 : index
    %17 = vector.load %arg11[%c0_14, %c0_15] : memref<2x256xf32, #tpu.memory_space<vmem>>, vector<2x256xf32>
    %18 = arith.truncf %16 : vector<2x128xf32> to vector<2x128xbf16>
    %c0_16 = arith.constant 0 : index
    %c0_17 = arith.constant 0 : index
    %19 = vector.load %arg6[%c0_16, %c0_17] : memref<128x256xbf16, #tpu.memory_space<vmem>>, vector<128x256xbf16>
    %cst_18 = arith.constant dense<0.000000e+00> : vector<2x256xf32>
    %20 = tpu.matmul %18, %19, %cst_18 {dimension_numbers = #tpu.dot_dimension_numbers<[1], [0], [0], [1], [0, 0, 1, 1], [], []>} : vector<2x128xbf16>, vector<128x256xbf16>, vector<2x256xf32> -> vector<2x256xf32>
    %21 = arith.addf %17, %20 : vector<2x256xf32>
    %c0_19 = arith.constant 0 : index
    %c0_20 = arith.constant 0 : index
    %22 = vector.load %arg11[%c0_19, %c0_20] : memref<2x256xf32, #tpu.memory_space<vmem>>, vector<2x256xf32>
    tpu.vector_store %arg11[%c0_19, %c0_20], %21 {strides = array<i32>} : memref<2x256xf32, #tpu.memory_space<vmem>>, vector<2x256xf32>,
    %c1_i32 = arith.constant 1 : i32
    %23 = arith.cmpi eq, %arg0, %c1_i32 : i32
    %24 = arith.extui %23 : i1 to i32
    %c0_i32_21 = arith.constant 0 : i32
    %25 = arith.cmpi ne, %24, %c0_i32_21 : i32
    scf.if %25 {
      %c0_22 = arith.constant 0 : index
      %c0_23 = arith.constant 0 : index
      %26 = vector.load %arg1[%c0_22, %c0_23] : memref<2x256xbf16, #tpu.memory_space<vmem>>, vector<2x256xbf16>
      %27 = arith.extf %26 : vector<2x256xbf16> to vector<2x256xf32>
      %c0_24 = arith.constant 0 : index
      %c0_25 = arith.constant 0 : index
      %28 = vector.load %arg2[%c0_24, %c0_25] : memref<2x256xbf16, #tpu.memory_space<vmem>>, vector<2x256xbf16>
      %29 = arith.extf %28 : vector<2x256xbf16> to vector<2x256xf32>
      %c0_26 = arith.constant 0 : index
      %c0_27 = arith.constant 0 : index
      %30 = vector.load %arg11[%c0_26, %c0_27] : memref<2x256xf32, #tpu.memory_space<vmem>>, vector<2x256xf32>
      %c0_28 = arith.constant 0 : index
      %c0_29 = arith.constant 0 : index
      %31 = vector.load %arg7[%c0_28, %c0_29] : memref<1x256xf32, #tpu.memory_space<vmem>>, vector<1x256xf32>
      %32 = vector.broadcast %31 : vector<1x256xf32> to vector<2x256xf32>
      %33 = arith.addf %30, %32 : vector<2x256xf32>
      %34 = arith.mulf %33, %27 : vector<2x256xf32>
      %35 = arith.negf %34 : vector<2x256xf32>
      %36 = math.exp %35 : vector<2x256xf32>
      %cst_30 = arith.constant 1.000000e+00 : f32
      %37 = vector.broadcast %cst_30 : f32 to vector<2x256xf32>
      %38 = arith.addf %37, %36 : vector<2x256xf32>
      %39 = arith.divf %37, %38 : vector<2x256xf32>
      %40 = arith.mulf %33, %29 : vector<2x256xf32>
      %41 = arith.negf %40 : vector<2x256xf32>
      %42 = math.exp %41 : vector<2x256xf32>
      %cst_31 = arith.constant 1.000000e+00 : f32
      %43 = vector.broadcast %cst_31 : f32 to vector<2x256xf32>
      %44 = arith.addf %43, %42 : vector<2x256xf32>
      %45 = arith.divf %43, %44 : vector<2x256xf32>
      %cst_32 = arith.constant 1.000000e+00 : f32
      %46 = vector.broadcast %cst_32 : f32 to vector<2x256xf32>
      %47 = arith.addf %46, %39 : vector<2x256xf32>
      %48 = arith.mulf %27, %47 : vector<2x256xf32>
      %cst_33 = arith.constant 1.000000e+00 : f32
      %49 = vector.broadcast %cst_33 : f32 to vector<2x256xf32>
      %50 = arith.addf %49, %45 : vector<2x256xf32>
      %51 = arith.mulf %27, %50 : vector<2x256xf32>
      %cst_34 = arith.constant 1.000000e+00 : f32
      %52 = vector.broadcast %cst_34 : f32 to vector<2x256xf32>
      %53 = arith.addf %52, %45 : vector<2x256xf32>
      %54 = arith.mulf %29, %53 : vector<2x256xf32>
      %cst_35 = arith.constant 1.000000e+00 : f32
      %55 = vector.broadcast %cst_35 : f32 to vector<2x256xf32>
      %56 = arith.addf %55, %39 : vector<2x256xf32>
      %57 = arith.mulf %29, %56 : vector<2x256xf32>
      %58 = tpu.concatenate %48, %51, %54, %57 in 0 : vector<2x256xf32>, vector<2x256xf32>, vector<2x256xf32>, vector<2x256xf32> -> vector<8x256xf32>
      %59 = arith.truncf %58 : vector<8x256xf32> to vector<8x256xbf16>
      %c0_36 = arith.constant 0 : index
      %c0_37 = arith.constant 0 : index
      %60 = vector.load %arg8[%c0_36, %c0_37] : memref<256x128xbf16, #tpu.memory_space<vmem>>, vector<256x128xbf16>
      %cst_38 = arith.constant dense<0.000000e+00> : vector<8x128xf32>
      %61 = tpu.matmul %59, %60, %cst_38 {dimension_numbers = #tpu.dot_dimension_numbers<[1], [0], [0], [1], [0, 0, 1, 1], [], []>} : vector<8x256xbf16>, vector<256x128xbf16>, vector<8x128xf32> -> vector<8x128xf32>
      %c0_39 = arith.constant 0 : index
      %c0_40 = arith.constant 0 : index
      %62 = vector.load %arg9[%c0_39, %c0_40] : memref<1x128xf32, #tpu.memory_space<vmem>>, vector<1x128xf32>
      %63 = vector.broadcast %62 : vector<1x128xf32> to vector<8x128xf32>
      %64 = arith.addf %61, %63 : vector<8x128xf32>
      %c0_41 = arith.constant 0 : index
      %c0_42 = arith.constant 0 : index
      %65 = vector.load %arg10[%c0_41, %c0_42] : memref<8x128xf32, #tpu.memory_space<vmem>>, vector<8x128xf32>
      tpu.vector_store %arg10[%c0_41, %c0_42], %64 {strides = array<i32>} : memref<8x128xf32, #tpu.memory_space<vmem>>, vector<8x128xf32>,
    } else {
    }
    return
  }
  func.func @transform_0(%arg0: i32) -> (i32, i32) {
    %c0_i32 = arith.constant 0 : i32
    %c0_i32_0 = arith.constant 0 : i32
    %c0_i32_1 = arith.constant 0 : i32
    return %c0_i32, %c0_i32_0 : i32, i32
  }
  func.func @transform_1(%arg0: i32) -> (i32, i32) {
    %c0_i32 = arith.constant 0 : i32
    %c0_i32_0 = arith.constant 0 : i32
    %c0_i32_1 = arith.constant 0 : i32
    return %c0_i32, %c0_i32_0 : i32, i32
  }
  func.func @transform_2(%arg0: i32) -> (i32, i32, i32) {
    %c0_i32 = arith.constant 0 : i32
    %c0_i32_0 = arith.constant 0 : i32
    %c0_i32_1 = arith.constant 0 : i32
    return %arg0, %c0_i32, %c0_i32_0 : i32, i32, i32
  }
  func.func @transform_3(%arg0: i32) -> (i32, i32, i32) {
    %c0_i32 = arith.constant 0 : i32
    %c0_i32_0 = arith.constant 0 : i32
    %c0_i32_1 = arith.constant 0 : i32
    return %arg0, %c0_i32, %c0_i32_0 : i32, i32, i32
  }
  func.func @transform_4(%arg0: i32) -> (i32, i32) {
    %c0_i32 = arith.constant 0 : i32
    %c0_i32_0 = arith.constant 0 : i32
    return %c0_i32, %arg0 : i32, i32
  }
  func.func @transform_5(%arg0: i32) -> (i32, i32) {
    %c0_i32 = arith.constant 0 : i32
    %c0_i32_0 = arith.constant 0 : i32
    return %arg0, %c0_i32 : i32, i32
  }
  func.func @transform_6(%arg0: i32) -> (i32, i32) {
    %c0_i32 = arith.constant 0 : i32
    %c0_i32_0 = arith.constant 0 : i32
    %c0_i32_1 = arith.constant 0 : i32
    return %c0_i32, %c0_i32_0 : i32, i32
  }
  func.func @transform_7(%arg0: i32) -> (i32, i32) {
    %c0_i32 = arith.constant 0 : i32
    %c0_i32_0 = arith.constant 0 : i32
    %c0_i32_1 = arith.constant 0 : i32
    return %c0_i32, %c0_i32_0 : i32, i32
  }
  func.func @transform_8(%arg0: i32) -> (i32, i32) {
    %c0_i32 = arith.constant 0 : i32
    %c0_i32_0 = arith.constant 0 : i32
    %c0_i32_1 = arith.constant 0 : i32
    return %c0_i32, %c0_i32_0 : i32, i32
  }
  func.func @transform_9(%arg0: i32) -> (i32, i32) {
    %c0_i32 = arith.constant 0 : i32
    %c0_i32_0 = arith.constant 0 : i32
    %c0_i32_1 = arith.constant 0 : i32
    return %c0_i32, %c0_i32_0 : i32, i32
  }
}

</mosaic_0001>

<bundles_post_ra>
// kernel: tpu_custom_call.1
= control target key start
LH: loop header
LB: loop body
LE: loop exit
PB: predicated region body
PF: predicated region fallthrough
CT: control target
= control target key end

     0   :  { %s2423_s0 = inlined_call_operand.hbm [shape: bf16[2,256], index: 0, kind: input, shape index: {}]   ;;  %s2424_s1 = inlined_call_operand.hbm [shape: bf16[2,256], index: 1, kind: input, shape index: {}]   ;;  %s2425_s2 = inlined_call_operand.hbm [shape: bf16[2,256,128], index: 2, kind: input, shape index: {}]   ;;  %s2426_s3 = inlined_call_operand.hbm [shape: bf16[2,256,128], index: 3, kind: input, shape index: {}]   ;;  %s2427_s4 = inlined_call_operand.vmem [shape: f32[1,256], index: 4, kind: input, shape index: {}]   ;;  %s2428_s5 = inlined_call_operand.hbm [shape: bf16[256,256], index: 5, kind: input, shape index: {}]   ;;  %s2429_s6 = inlined_call_operand.vmem [shape: f32[1,256], index: 6, kind: input, shape index: {}]   ;;  %s2430_s7 = inlined_call_operand.hbm [shape: bf16[256,128], index: 7, kind: input, shape index: {}]   ;;  %s2431_s8 = inlined_call_operand.vmem [shape: f32[1,128], index: 8, kind: input, shape index: {}]   ;;  %s2432_s9 = inlined_call_operand.hbm [shape: f32[8,128], index: 9, kind: output, shape index: {}]  }
   0x1   :  { %2445 = sst [smem:[#allocation20_spill]] %s2423_s0 }
   0x2   :  { %2446 = sst [smem:[#allocation21_spill]] %s2424_s1 }
   0x3   :  { %14 = vsyncpa [#allocation4], 0 }
   0x4   :  { %15 = vsyncpa [#allocation7], 0 }
   0x5   :  { %16 = vsyncpa [#allocation5], 0  ;;  %s2084_s30 = smov 0   ;;  %s2086_s10 = smov 0  }
   0x6   :  { %s2088_s11 = smov 0   ;;  %s2090_s12 = smov 0  }
   0x7 LB: > { %2447 = sst [smem:[#allocation18_spill]] %s2013_s11  ;;  %s2103_s13 = sadd.s32 4294967295, %s2017_s12   ;;  %s2017_s12 = sphi %s2090_s12, %s2476_s12   ;;  %s2013_s11 = sphi %s2088_s11, %s2473_s11   ;;  %s2009_s10 = sphi %s2086_s10, %s2475_s10   ;;  %s2005_s30 = sphi %s2084_s30, %s2474_s30  }
   0x8   : > { %s2106_s14 = sadd.s32 1, %s2017_s12   ;;  %s71_s16 = sadd.s32 1, %s2013_s11 }
   0x9   : > { %s68_s15 = ssub.s32 %s2017_s12, %s2106_s14  ;;  %p78_p1 = scmp.ne.s32.totalorder %s2013_s11, %s2009_s10 }
   0xa   : > { %p69_p0 = scmp.eq.s32.totalorder %s68_s15, 0  ;;  %p79_p2 = scmp.eq.s32.totalorder %s2017_s12, 0 }
   0xb   : > { %p84_p3 = scmp.ne.s32.totalorder %s2009_s10, %s2005_s30  ;;  %p2433_p5 = scmp.eq.s32.totalorder %s2103_s13, 0 }
   0xc   : > { %s2116_s17 = scalar_select %p69_p0, %s2013_s11, %s71_s16  }
   0xd   : > { %p2118_p4 = por %p79_p2, %p78_p1  ;;  %p1438_p6 = scmp.ge.s32.totalorder %s2017_s12, 1 }
   0xe   : > { %2448 = sst [smem:[#allocation19_spill]] %s2116_s17  ;;  %p257_p7 = scmp.lt.s32.totalorder %s2017_s12, 3 }
   0xf   : > { %p2127_p8 = por %p2433_p5, %p84_p3  ;;  %s2019_s21 = smov [#allocation3]  }
  0x10   : > { %p2132_p10 = pnand %p1438_p6, %p257_p7  ;;  %s270_s22 = sshll.u32 %s2019_s21, 4  ;;  %s271_s22 = int_to_ptr.vmem [resolvable:$true] %s270_s22 }
  0x11   : > { %s2450_s19 = scalar_select %p2127_p8, 1, 0 }
  0x12   : > { %s2451_s20 = scalar_select %p2132_p10, 1, 0 }
  0x13   : > { %p1628_p11 = pneg %p2132_p10  ;;  %p1651_p12 = scmp.lt.s32.totalorder %s2017_s12, 2 }
  0x14   : > { %s311_s25 = sand.u32 1, %s2017_s12   ;;  %s1792_s26 = scalar_lea.vmem %s271_s22, 32 }
  0x15   : > { %p2141_p13 = pnand %p1628_p11, %p2433_p5  ;;  %p2147_p0 = pnand %p1651_p12, %p2118_p4 }
  0x16   : > { %p1793_p2 = scmp.ne.s32.totalorder %s271_s22, %s1792_s26  ;;  %p1800_p7 = scmp.lt.s32.totalorder %s271_s22, %s271_s22 }
  0x17   : > { %s2452_s23 = scalar_select %p2141_p13, 1, 0 }
  0x18   : > { %p2435_p1 = pneg %p2141_p13  ;;  %p1801_p11 = scmp.lt.s32.totalorder %s1792_s26, %s1792_s26 }
  0x1a   : > { %p1795_p3 = pnand %p1793_p2, %p2435_p1  ;;  %p1802_p9 = por %p1801_p11, %p1800_p7 }
  0x1c   : > { %p1796_p6 = pneg %p1795_p3 }
  0x1e   : > { %p1803_p5 = pnand %p1802_p9, %p1796_p6 }
  0x20   : > { %1806 = shalt.err (!%p1803_p5)
}
  0x21   : > { %s2454_s0 = sld [smem:[#allocation20_spill]]  ;;  %s313_s29 = sand.u32 1, %s2013_s11  }
  0x22   : > { %s2163_s30 = sshll.u32 %s313_s29, 7  ;;  %s2166_s15 = sshll.u32 %s2017_s12, 11 }
  0x23   : > { %s2172_s21 = scalar_lea.hbm %s2425_s2, %s2166_s15  ;;  %s315_s26 = scalar_lea.vmem [#allocation8], %s2163_s30 }
  0x24   : > { %s322_s27 = sshll.u32 %s315_s26, 4  ;;  %s2179_s29 = scalar_lea.sflag [#allocation4], %s311_s25  ;;  %s2175_s27 = int_to_ptr.vmem [resolvable:$true] %s322_s27 }
  0x25   : > { %s1807_s12 = scalar_lea.hbm %s2172_s21, 2048  ;;  %p2185_p5 = pneg %p2147_p0 }
  0x26   : > { %p1808_p4 = scmp.ne.s32.totalorder %s2172_s21, %s1807_s12  ;;  %s1812_s26 = scalar_lea.hbm %s2425_s2, 4096 }
  0x27   : > { %1631 = dma.hbm_to_vmem [thread:$0]  (!%p2141_p13), %s2454_s0, 32, %s271_s22, [#allocation4]  }
  0x28   : > { %s2020_s22 = smov [#allocation6]   ;;  %p1810_p9 = pnand %p2185_p5, %p1808_p4 }
  0x29   : > { %s2177_s28 = sshll.u32 %s2020_s22, 4  ;;  %p1813_p2 = scmp.lt.s32.totalorder %s2172_s21, %s2425_s2  ;;  %s282_s28 = int_to_ptr.vmem [resolvable:$true] %s2177_s28 }
  0x2a   : > { %p1811_p12 = pneg %p1810_p9  ;;  %p1814_p3 = scmp.lt.s32.totalorder %s1812_s26, %s1807_s12 }
  0x2c   : > { %p1815_p6 = por %p1814_p3, %p1813_p2 }
  0x2e   : > { %p1816_p7 = pnand %p1815_p6, %p1811_p12 }
  0x30   : > { %1819 = shalt.err (!%p1816_p7)
}
  0x31   : > { %s1820_s25 = scalar_lea.vmem %s2175_s27, 2048  ;;  %s2021_s11 = smov [#allocation8]  }
  0x32   : > { %p1821_p11 = scmp.ne.s32.totalorder %s2175_s27, %s1820_s25  ;;  %s1825_s16 = sshll.u32 %s2021_s11, 4  ;;  %s1826_s16 = int_to_ptr.vmem [resolvable:$false] %s1825_s16 }
  0x33   : > { %s1827_s18 = scalar_lea.vmem %s1826_s16, 4096  ;;  %p1828_p1 = scmp.lt.s32.totalorder %s2175_s27, %s1826_s16 }
  0x34   : > { %p1823_p4 = pnand %p1821_p11, %p2185_p5  ;;  %p1829_p8 = scmp.lt.s32.totalorder %s1827_s18, %s1820_s25 }
  0x36   : > { %p1824_p9 = pneg %p1823_p4  ;;  %p1830_p10 = por %p1829_p8, %p1828_p1 }
  0x38   : > { %p1831_p13 = pnand %p1830_p10, %p1824_p9 }
  0x3a   : > { %1834 = shalt.err (!%p1831_p13)
}
  0x3b   : > { %s2440_s17 = smov 64   ;;  %s2442_s12 = smov 4  }
  0x3c   : > { %1641 = dma.hbm_to_vmem [thread:$0]  (!%p2147_p0), %s2172_s21, 2048, %s2175_s27, %s2179_s29, %s2440_s17, %s2440_s17, %s2442_s12  }
  0x3d   : > { %s1846_s11 = scalar_lea.vmem %s282_s28, 32  ;;  %p2456_p2 = scmp.ne.s32.totalorder %s2452_s23, 0 }
  0x3e   : > { %p1847_p12 = scmp.ne.s32.totalorder %s282_s28, %s1846_s11  ;;  %p1854_p1 = scmp.lt.s32.totalorder %s282_s28, %s282_s28 }
  0x3f   : > { %p2457_p8 = pneg %p2456_p2  ;;  %p1855_p3 = scmp.lt.s32.totalorder %s1846_s11, %s1846_s11 }
  0x41   : > { %p1849_p10 = pnand %p1847_p12, %p2457_p8  ;;  %p1856_p6 = por %p1855_p3, %p1854_p1 }
  0x43   : > { %p1850_p13 = pneg %p1849_p10 }
  0x45   : > { %p1857_p7 = pnand %p1856_p6, %p1850_p13 }
  0x47   : > { %1860 = shalt.err (!%p1857_p7)
}
  0x48   : > { %s2458_s1 = sld [smem:[#allocation21_spill]]  ;;  %s2224_s25 = scalar_lea.hbm %s2426_s3, %s2166_s15 }
  0x49   : > { %s336_s16 = scalar_lea.vmem [#allocation9], %s2163_s30  ;;  %s1861_s11 = scalar_lea.hbm %s2224_s25, 2048 }
  0x4a   : > { %s343_s18 = sshll.u32 %s336_s16, 4  ;;  %p1862_p11 = scmp.ne.s32.totalorder %s2224_s25, %s1861_s11  ;;  %s344_s18 = int_to_ptr.vmem [resolvable:$true] %s343_s18 }
  0x4b   : > { %p1867_p12 = scmp.lt.s32.totalorder %s2224_s25, %s2426_s3 }
  0x4c   : > { %p1864_p4 = pnand %p1862_p11, %p2185_p5 }
  0x4e   : > { %1634 = dma.hbm_to_vmem [thread:$0]  (!%p2456_p2), %s2458_s1, 32, %s282_s28, [#allocation7]  }
  0x4f   : > { %p1865_p9 = pneg %p1864_p4  ;;  %s1866_s28 = scalar_lea.hbm %s2426_s3, 4096 }
  0x50   : > { %p1868_p8 = scmp.lt.s32.totalorder %s1866_s28, %s1861_s11 }
  0x52   : > { %p1869_p10 = por %p1868_p8, %p1867_p12 }
  0x54   : > { %p1870_p13 = pnand %p1869_p10, %p1865_p9 }
  0x56   : > { %1873 = shalt.err (!%p1870_p13)
}
  0x57   : > { %s1874_s21 = scalar_lea.vmem %s344_s18, 2048  ;;  %s2024_s27 = smov [#allocation9]  }
  0x58   : > { %p1875_p1 = scmp.ne.s32.totalorder %s344_s18, %s1874_s21  ;;  %s1879_s16 = sshll.u32 %s2024_s27, 4  ;;  %s1880_s16 = int_to_ptr.vmem [resolvable:$false] %s1879_s16 }
  0x59   : > { %s1881_s1 = scalar_lea.vmem %s1880_s16, 4096  ;;  %p1882_p7 = scmp.lt.s32.totalorder %s344_s18, %s1880_s16 }
  0x5a   : > { %p1877_p3 = pnand %p1875_p1, %p2185_p5  ;;  %p1883_p11 = scmp.lt.s32.totalorder %s1881_s1, %s1874_s21 }
  0x5c   : > { %p1878_p6 = pneg %p1877_p3  ;;  %p1884_p4 = por %p1883_p11, %p1882_p7 }
  0x5e   : > { %p1885_p2 = pnand %p1884_p4, %p1878_p6 }
  0x60   : > { %1888 = shalt.err (!%p1885_p2)
}
  0x61   : > { %s2459_s17 = smov 4   ;;  %s2460_s12 = smov 64  }
  0x62   : > { %1644 = dma.hbm_to_vmem [thread:$0]  (!%p2147_p0), %s2224_s25, 2048, %s344_s18, %s2179_s29, %s2460_s12, %s2460_s12, %s2459_s17  }
  0x63   : > { %s2025_s11 = smov [#allocation11]   ;;  %s2251_s1 = scalar_lea.hbm %s2428_s5, %s2166_s15 }
  0x64   : > { %s294_s26 = sshll.u32 %s2025_s11, 4  ;;  %p2461_p9 = scmp.ne.s32.totalorder %s2452_s23, 0  ;;  %s295_s26 = int_to_ptr.vmem [resolvable:$true] %s294_s26 }
  0x65   : > { %s1900_s21 = scalar_lea.vmem %s295_s26, 2048  ;;  %p1908_p13 = scmp.lt.s32.totalorder %s295_s26, %s295_s26 }
  0x66   : > { %p1901_p2 = scmp.ne.s32.totalorder %s295_s26, %s1900_s21  ;;  %p2462_p12 = pneg %p2461_p9 }
  0x67   : > { %p1909_p1 = scmp.lt.s32.totalorder %s1900_s21, %s1900_s21 }
  0x68   : > { %p1903_p8 = pnand %p1901_p2, %p2462_p12 }
  0x69   : > { %p1910_p3 = por %p1909_p1, %p1908_p13 }
  0x6a   : > { %p1904_p10 = pneg %p1903_p8 }
  0x6c   : > { %p1911_p6 = pnand %p1910_p3, %p1904_p10 }
  0x6e   : > { %1914 = shalt.err (!%p1911_p6)
}
  0x6f   : > { %1637 = dma.hbm_to_vmem [thread:$0]  (!%p2461_p9), %s2430_s7, 2048, %s295_s26, [#allocation7], %s2460_s12, %s2460_s12, %s2459_s17  }
  0x70   : > { %s363_s15 = scalar_lea.vmem [#allocation10], %s2163_s30  ;;  %s1915_s16 = scalar_lea.hbm %s2251_s1, 2048 }
  0x71   : > { %s371_s27 = sshll.u32 %s363_s15, 4  ;;  %p1916_p7 = scmp.ne.s32.totalorder %s2251_s1, %s1915_s16  ;;  %s2265_s27 = int_to_ptr.vmem [resolvable:$true] %s371_s27 }
  0x72   : > { %s1920_s22 = scalar_lea.hbm %s2428_s5, 4096  ;;  %p1921_p2 = scmp.lt.s32.totalorder %s2251_s1, %s2428_s5 }
  0x73   : > { %p1918_p11 = pnand %p1916_p7, %p2185_p5  ;;  %p1922_p12 = scmp.lt.s32.totalorder %s1920_s22, %s1915_s16 }
  0x75   : > { %p1919_p4 = pneg %p1918_p11  ;;  %p1923_p8 = por %p1922_p12, %p1921_p2 }
  0x77   : > { %p1924_p9 = pnand %p1923_p8, %p1919_p4 }
  0x79   : > { %1927 = shalt.err (!%p1924_p9)
}
  0x7a   : > { %s1928_s30 = scalar_lea.vmem %s2265_s27, 2048  ;;  %s2026_s17 = smov [#allocation10]  }
  0x7b   : > { %p1929_p10 = scmp.ne.s32.totalorder %s2265_s27, %s1928_s30  ;;  %s1933_s12 = sshll.u32 %s2026_s17, 4  ;;  %s1934_s12 = int_to_ptr.vmem [resolvable:$false] %s1933_s12 }
  0x7c   : > { %s1935_s26 = scalar_lea.vmem %s1934_s12, 4096  ;;  %p1936_p3 = scmp.lt.s32.totalorder %s2265_s27, %s1934_s12 }
  0x7d   : > { %p1931_p13 = pnand %p1929_p10, %p2185_p5  ;;  %p1937_p6 = scmp.lt.s32.totalorder %s1935_s26, %s1928_s30 }
  0x7f   : > { %p1932_p1 = pneg %p1931_p13  ;;  %p1938_p7 = por %p1937_p6, %p1936_p3 }
  0x81   : > { %p1939_p11 = pnand %p1938_p7, %p1932_p1 }
  0x83   : > { %1942 = shalt.err (!%p1939_p11)
}
  0x84   : > { %s2027_s25 = smov 128   ;;  %s2028_s18 = smov 8  }
  0x85   : > { %1647 = dma.hbm_to_vmem [thread:$0]  (!%p2147_p0), %s2251_s1, 2048, %s2265_s27, %s2179_s29, %s2027_s25, %s2027_s25, %s2028_s18  }
  0x86   : > { %p2463_p5 = scmp.ne.s32.totalorder %s2451_s20, 0 }
  0x87   : > { %p2464_p4 = scmp.eq.s32.totalorder (!%p2463_p5), %s2103_s13, 0 }
  0x88   : > { %383 = sbr.rel (%p2463_p5) target bundleno = 886 (0x376), region = 56 }
  0x8d   : > { %1984 = dma.done.wait (%p2464_p4), [#allocation4], 32   ;;  %p2465_p2 = pmov %p2464_p4 }
  0x8f   : > { %1986 = vsyncadd (%p2465_p2), [#allocation4], 4294967264  ;;  %p2466_p12 = pmov %p2465_p2 }
  0x90   : > { %p2467_p8 = pmov %p2465_p2 }
  0x91   : > { %1988 = dma.done.wait (%p2466_p12), [#allocation7], 32  }
  0x92   : > { %1990 = vsyncadd (%p2467_p8), [#allocation7], 4294967264  ;;  %s393_s0 = sand.u32 1, %s2103_s13   ;;  %s395_s24 = sand.u32 1, %s2009_s10  }
  0x93   : > { %s1456_s29 = sshll.u32 %s395_s24, 7  ;;  %s394_s20 = scalar_lea.sflag [#allocation4], %s393_s0 }
  0x94   : > { %s2300_s1 = scalar_lea.vmem [#allocation8], %s1456_s29  ;;  %p2468_p0 = scmp.ne.s32.totalorder %s2450_s19, 0 }
  0x96   : > { %1992 = dma.done.wait (%p2468_p0), %s394_s20, 6144  }
  0x97   : > { %1994 = vsyncadd (%p2468_p0), %s394_s20, 4294961152  ;;  %s2306_s15 = scalar_lea.vmem [#allocation9], %s1456_s29  ;;  %s2308_s27 = scalar_lea.vmem [#allocation10], %s1456_s29 }
  0x98   : > { %p2469_p9 = pmov %p2465_p2 }
  0x99   : > { %p2470_p10 = pmov %p2465_p2 }
  0x9a   : > { %1996 = dma.done.wait (%p2469_p9), [#allocation7], 2048  }
  0x9b   : > { %1998 = vsyncadd (%p2470_p10), [#allocation7], 4294965248  ;;  %p462_p13 = scmp.lt.s32.totalorder %s2103_s13, 1  ;;  %p2471_p1 = scmp.ne.s32.totalorder %s2103_s13, 0 }
  0x9d   : > { %s2316_s16 = scalar_select %p462_p13, %s2103_s13, 1 }
  0x9e   : > { %470 = sbr.rel (%p2471_p1) target bundleno = 165 (0xa5), region = 84 }
  0x9f   : > { %s464_s19 = scalar_lea.vmem %s2427_s4, %s2316_s16 }
  0xa3   : > { %v2029_v0 = vmov 0.0  }
  0xa4   : > { %471 = vst [vmem:[#allocation2] sm:$0xf] %v2029_v0 }
  0xa5 PF: > { %v1701_v1 = vld [vmem:[%s2306_s15 + $0x78] sm:$0xff]   ;;  %v1705_v5 = vld [vmem:[%s2306_s15 + $0x70] sm:$0xff]   ;;  %v1709_v9 = vld [vmem:[%s2306_s15 + $0x68] sm:$0xff]   ;;  %v550_v29 = vlaneseq  ;;  %v2030_v36 = vmov 1966171168   ;;  %v2031_v63 = vmov 0  }
  0xa6   : > { %v1702_v2 = vld [vmem:[%s2300_s1 + $0x78] sm:$0xff]   ;;  %1540 = vmatprep.subr.bf16.mxu0 %v1701_v1  ;;  %v1706_v6 = vld [vmem:[%s2300_s1 + $0x70] sm:$0xff]   ;;  %v1710_v10 = vld [vmem:[%s2300_s1 + $0x68] sm:$0xff]   ;;  %v548_v37 = vunpack.c.l.s4 %v2030_v36  ;;  %p1512_p3 = scmp.ne.s32.totalorder %s2103_s13, 1 }
  0xa7   : > { %v1703_v3 = vld [vmem:[%s2306_s15 + $0x38] sm:$0xff]   ;;  %1562 = vmatprep.subr.bf16.mxu1 %v1702_v2  ;;  %v1707_v7 = vld [vmem:[%s2306_s15 + $0x30] sm:$0xff]   ;;  %v1711_v11 = vld [vmem:[%s2306_s15 + $0x28] sm:$0xff]   ;;  %v2356_v34 = vshrl.u32 %v550_v29, 7 }
  0xa8   : > { %v1704_v4 = vld [vmem:[%s2300_s1 + $0x38] sm:$0xff]   ;;  %1541 = vmatpush3.bf16.msra.mxu0 %v1703_v3  ;;  %v1708_v8 = vld [vmem:[%s2300_s1 + $0x30] sm:$0xff]   ;;  %v1712_v12 = vld [vmem:[%s2300_s1 + $0x28] sm:$0xff]   ;;  %v549_v41 = vunpack.c.0.s8 %v548_v37 }
  0xa9   : > { %1563 = vmatpush3.bf16.msra.mxu1 %v1704_v4  ;;  %1542 = vmatprep.subr.bf16.mxu0 %v1705_v5  ;;  %v1713_v13 = vld [vmem:[%s2306_s15 + $0x60] sm:$0xff]   ;;  %v1717_v17 = vld [vmem:[%s2306_s15 + $0x58] sm:$0xff]   ;;  %v1721_v21 = vld [vmem:[%s2306_s15 + $0x50] sm:$0xff]  }
  0xaa   : > { %1564 = vmatprep.subr.bf16.mxu1 %v1706_v6  ;;  %v1714_v14 = vld [vmem:[%s2300_s1 + $0x60] sm:$0xff]   ;;  %v1718_v18 = vld [vmem:[%s2300_s1 + $0x58] sm:$0xff]   ;;  %v1722_v22 = vld [vmem:[%s2300_s1 + $0x50] sm:$0xff]   ;;  %v552_v43 = vsub.s32 %v549_v41, %v2356_v34 }
  0xab   : > { %v1715_v15 = vld [vmem:[%s2306_s15 + $0x20] sm:$0xff]   ;;  %v1719_v19 = vld [vmem:[%s2306_s15 + $0x18] sm:$0xff]   ;;  %v1723_v23 = vld [vmem:[%s2306_s15 + $0x10] sm:$0xff]  }
  0xac   : > { %1543 = vmatpush3.bf16.msra.mxu0 %v1707_v7  ;;  %v1716_v16 = vld [vmem:[%s2300_s1 + $0x20] sm:$0xff]   ;;  %v1720_v20 = vld [vmem:[%s2300_s1 + $0x18] sm:$0xff]   ;;  %v1724_v24 = vld [vmem:[%s2300_s1 + $0x10] sm:$0xff]  }
  0xad   : > { %1565 = vmatpush3.bf16.msra.mxu1 %v1708_v8  ;;  %1544 = vmatprep.subr.bf16.mxu0 %v1709_v9  ;;  %v1725_v25 = vld [vmem:[%s2306_s15 + $0x48] sm:$0xff]   ;;  %v1729_v30 = vld [vmem:[%s2306_s15 + $0x40] sm:$0xff]   ;;  %v1461_v35 = vld.sshfl [vmem:[#allocation6] sm:$0x11 pattern:$0x75316420] }
  0xae   : > { %1566 = vmatprep.subr.bf16.mxu1 %v1710_v10  ;;  %v1726_v26 = vld [vmem:[%s2300_s1 + $0x48] sm:$0xff]   ;;  %v1730_v31 = vld [vmem:[%s2300_s1 + $0x40] sm:$0xff]   ;;  %v1478_v38 = vld.sshfl [vmem:[#allocation3] sm:$0x11 pattern:$0x75316420]  ;;  %v546_v40 = vcombine.high %v1461_v35, %v1461_v35  ;;  %v553_v46 = vrot.slane %v1461_v35, %v552_v43 }
  0xaf   : > { %v1727_v27 = vld [vmem:[%s2306_s15 + $0x8] sm:$0xff]   ;;  %v1731_v32 = vld [vmem:[%s2306_s15] sm:$0xff]   ;;  %v1735_v39 = vld [vmem:[%s2308_s27 + $0x74] ss:$8 sps:$4 sm:$0xff]   ;;  %v707_v42 = vcombine.high %v1478_v38, %v1478_v38  ;;  %v714_v47 = vrot.slane %v1478_v38, %v552_v43 }
  0xb0   : > { %1545 = vmatpush3.bf16.msra.mxu0 %v1711_v11  ;;  %v1728_v28 = vld [vmem:[%s2300_s1 + $0x8] sm:$0xff]   ;;  %v1732_v33 = vld [vmem:[%s2300_s1] sm:$0xff]   ;;  %v560_v44 = vrot.slane %v546_v40, %v552_v43  ;;  %v1733_v48 = vld [vmem:[%s2308_s27 + $0x70] ss:$8 sps:$4 sm:$0xff]  }
  0xb1   : > { %1567 = vmatpush3.bf16.msra.mxu1 %v1712_v12  ;;  %1546 = vmatprep.subr.bf16.mxu0 %v1713_v13  ;;  %v721_v45 = vrot.slane %v707_v42, %v552_v43  ;;  %v1738_v49 = vld [vmem:[%s2308_s27 + $0x64] ss:$8 sps:$4 sm:$0xff]   ;;  %v1736_v50 = vld [vmem:[%s2308_s27 + $0x60] ss:$8 sps:$4 sm:$0xff]   ;;  %v1741_v51 = vld [vmem:[%s2308_s27 + $0x54] ss:$8 sps:$4 sm:$0xff]  }
  0xb2   : > { %1568 = vmatprep.subr.bf16.mxu1 %v1714_v14  ;;  %691 = vmatprep.mubr.bf16.mxu0 %v560_v44  ;;  %v1739_v52 = vld [vmem:[%s2308_s27 + $0x50] ss:$8 sps:$4 sm:$0xff]   ;;  %v1744_v53 = vld [vmem:[%s2308_s27 + $0x44] ss:$8 sps:$4 sm:$0xff]   ;;  %v1742_v54 = vld [vmem:[%s2308_s27 + $0x40] ss:$8 sps:$4 sm:$0xff]  }
  0xb3   : > { %852 = vmatprep.mubr.bf16.mxu1 %v721_v45  ;;  %v1747_v55 = vld [vmem:[%s2308_s27 + $0x34] ss:$8 sps:$4 sm:$0xff]   ;;  %v1745_v56 = vld [vmem:[%s2308_s27 + $0x30] ss:$8 sps:$4 sm:$0xff]   ;;  %v1750_v57 = vld [vmem:[%s2308_s27 + $0x24] ss:$8 sps:$4 sm:$0xff]  }
  0xb4   : > { %1547 = vmatpush3.bf16.msra.mxu0 %v1715_v15  ;;  %v1748_v58 = vld [vmem:[%s2308_s27 + $0x20] ss:$8 sps:$4 sm:$0xff]   ;;  %v1753_v59 = vld [vmem:[%s2308_s27 + $0x14] ss:$8 sps:$4 sm:$0xff]   ;;  %v1751_v60 = vld [vmem:[%s2308_s27 + $0x10] ss:$8 sps:$4 sm:$0xff]  }
  0xb5   : > { %1569 = vmatpush3.bf16.msra.mxu1 %v1716_v16  ;;  %1548 = vmatprep.subr.bf16.mxu0 %v1717_v17  ;;  %v1756_v61 = vld [vmem:[%s2308_s27 + $0x4] ss:$8 sps:$4 sm:$0xff]   ;;  %v1754_v62 = vld [vmem:[%s2308_s27] ss:$8 sps:$4 sm:$0xff]   ;;  %v1495_v6 = vld [vmem:[%s464_s19] ss:$0 sm:$0xff] }
  0xb6   : > { %1570 = vmatprep.subr.bf16.mxu1 %v1718_v18  ;;  %v2032_v15 = vmov 1983009808  }
  0xb7   : > { %v1012_v16 = vunpack.c.l.s4 %v2032_v15 }
  0xb8   : > { %1549 = vmatpush3.bf16.msra.mxu0 %v1719_v19 }
  0xb9   : > { %1571 = vmatpush3.bf16.msra.mxu1 %v1720_v20  ;;  %1550 = vmatprep.subr.bf16.mxu0 %v1721_v21  ;;  %v1013_v17 = vunpack.c.0.s8 %v1012_v16 }
  0xba   : > { %1572 = vmatprep.subr.bf16.mxu1 %v1722_v22  ;;  %v869_v22 = vld [vmem:[#allocation2] sm:$0xf] }
  0xbb   : > { %v2381_v19 = vsub.s32 %v1013_v17, %v2356_v34 }
  0xbc   : > { %1551 = vmatpush3.bf16.msra.mxu0 %v1723_v23 }
  0xbd   : > { %1573 = vmatpush3.bf16.msra.mxu1 %v1724_v24  ;;  %1552 = vmatprep.subr.bf16.mxu0 %v1725_v25 }
  0xbe   : > { %1574 = vmatprep.subr.bf16.mxu1 %v1726_v26 }
  0xc0   : > { %1553 = vmatpush3.bf16.msra.mxu0 %v1727_v27 }
  0xc1   : > { %1575 = vmatpush3.bf16.msra.mxu1 %v1728_v28  ;;  %1554 = vmatprep.subr.bf16.mxu0 %v1729_v30 }
  0xc2   : > { %1576 = vmatprep.subr.bf16.mxu1 %v1730_v31 }
  0xc4   : > { %1555 = vmatpush3.bf16.msra.mxu0 %v1731_v32 }
  0xc5   : > { %1577 = vmatpush3.bf16.msra.mxu1 %v1732_v33  ;;  %967 = vmatprep.subr.bf16.mxu0 %v1735_v39 }
  0xc7   : > { %692 = vmatmul.mubr.bf16.vlgmr.msra.gmra.mxu0 %v553_v46 }
  0xc8   : > { %853 = vmatmul.mubr.bf16.vlgmr.msra.gmra.mxu1 %v714_v47  ;;  %968 = vmatpush1.bf16.msra.mxu0 %v1733_v48 }
  0xc9   : > { %969 = vmatprep.subr.bf16.mxu0 %v1738_v49  ;;  %999 = vmatprep.mubr.bf16.mxu0 %v2031_v63 }
  0xcc   : > { %970 = vmatpush1.bf16.msra.mxu0 %v1736_v50 }
  0xcd   : > { %971 = vmatprep.subr.bf16.mxu0 %v1741_v51 }
  0xd0   : > { %972 = vmatpush1.bf16.msra.mxu0 %v1739_v52 }
  0xd1   : > { %973 = vmatprep.subr.bf16.mxu0 %v1744_v53 }
  0xd4   : > { %974 = vmatpush1.bf16.msra.mxu0 %v1742_v54 }
  0xd5   : > { %975 = vmatprep.subr.bf16.mxu0 %v1747_v55 }
  0xd8   : > { %976 = vmatpush1.bf16.msra.mxu0 %v1745_v56 }
  0xd9   : > { %977 = vmatprep.subr.bf16.mxu0 %v1750_v57 }
  0xdc   : > { %978 = vmatpush1.bf16.msra.mxu0 %v1748_v58 }
  0xdd   : > { %979 = vmatprep.subr.bf16.mxu0 %v1753_v59 }
  0xe0   : > { %980 = vmatpush1.bf16.msra.mxu0 %v1751_v60 }
  0xe1   : > { %981 = vmatprep.subr.bf16.mxu0 %v1756_v61 }
  0xe4   : > { %982 = vmatpush1.bf16.msra.mxu0 %v1754_v62 }
 0x187   : > { %v1556_v0 = vpop.f32.mrf.mxu0 }
 0x188   : > { %v1578_v1 = vpop.f32.mrf.mxu1 }
 0x189   : > { %v1557_v2 = vpop.f32.mrf.mxu0 }
 0x18a   : > { %v1579_v3 = vpop.f32.mrf.mxu1  ;;  %v1558_v4 = vadd.f32 %v1557_v2, %v1556_v0 }
 0x18b   : > { %v1580_v5 = vadd.f32 %v1579_v3, %v1578_v1  ;;  %v1559_v7 = vpop.f32.mrf.mxu0 }
 0x18c   : > { %v1581_v8 = vpop.f32.mrf.mxu1 }
 0x18d   : > { %v855_v9 = vadd.f32 %v1580_v5, %v1558_v4  ;;  %v1560_v10 = vpop.f32.mrf.mxu0 }
 0x18e   : > { %v1582_v11 = vpop.f32.mrf.mxu1 }
 0x18f   : > { %v867_v12 = vadd.f32 %v1495_v6, %v855_v9 }
 0x191   : > { %v868_v13 = vmax.f32 %v867_v12, 0.0 }
 0x193   : > { %v870_v14 = vpack.c.bf16 %v868_v13, %v868_v13 }
 0x195   : > { %1000 = vmatmul.mubr.bf16.vlgmr.msra.gmra.mxu0 %v870_v14 }
 0x255   : > { %v1001_v18 = vpop.f32.mrf.mxu0 }
 0x257   : > { %v1003_v20 = vpop.f32.mrf.mxu0 }
 0x258   : > { %v1010_v21 = vcombine.low %v1001_v18, %v1003_v20 }
 0x259   : > { %v1005_v23 = vpop.f32.mrf.mxu0 }
 0x25a   : > { %v1017_v24 = vrot.slane %v1010_v21, %v2381_v19  ;;  %1024 = sbr.rel (%p1512_p3) target bundleno = 871 (0x367), region = 88 }
 0x25b   : > { %v1006_v25 = vpop.f32.mrf.mxu0 }
 0x25c   : > { %v1019_v26 = vadd.f32 %v1017_v24, %v869_v22 }
 0x25e   : > { %1020 = vst [vmem:[#allocation2] sm:$0xf] %v1019_v26 }
 0x25f   : > { %v1757_v27 = vld [vmem:[#allocation11 + $0x78] sm:$0xff]   ;;  %v1759_v29 = vld [vmem:[#allocation11 + $0x70] sm:$0xff]   ;;  %v1761_v31 = vld [vmem:[#allocation11 + $0x68] sm:$0xff]   ;;  %v1034_v37 = vsub.s32 0, %v2356_v34  ;;  %v1038_v38 = vsub.s32 1, %v2356_v34  ;;  %vm1116_vm0 = vcmask 1041408  }
 0x260   : > { %v1758_v28 = vld [vmem:[#allocation11 + $0x38] sm:$0xff]   ;;  %1584 = vmatprep.subr.bf16.mxu0 %v1757_v27  ;;  %v1760_v30 = vld [vmem:[#allocation11 + $0x30] sm:$0xff]   ;;  %v1762_v32 = vld [vmem:[#allocation11 + $0x28] sm:$0xff]   ;;  %vm1119_vm1 = vcmask 1043456   ;;  %vm1122_vm2 = vcmask 1045504  }
 0x261   : > { %1585 = vmatpush3.bf16.msra.mxu0 %v1758_v28  ;;  %v1763_v33 = vld [vmem:[#allocation11 + $0x60] sm:$0xff]   ;;  %v1765_v36 = vld [vmem:[#allocation11 + $0x58] sm:$0xff]   ;;  %v1767_v40 = vld [vmem:[#allocation11 + $0x50] sm:$0xff]  }
 0x262   : > { %1586 = vmatprep.subr.bf16.mxu0 %v1759_v29  ;;  %v1764_v35 = vld [vmem:[#allocation11 + $0x20] sm:$0xff]   ;;  %v1766_v39 = vld [vmem:[#allocation11 + $0x18] sm:$0xff]   ;;  %v1768_v44 = vld [vmem:[#allocation11 + $0x10] sm:$0xff]  }
 0x263   : > { %v1030_v41 = vld [vmem:[%s2429_s6] sm:$0x3]  ;;  %v1025_v45 = vld [vmem:[#allocation3] sm:$0x3]  ;;  %v1027_v46 = vld [vmem:[#allocation6] sm:$0x3] }
 0x264   : > { %v1035_v42 = vrot.slane %v1030_v41, %v1034_v37  ;;  %v1039_v43 = vrot.slane %v1030_v41, %v1038_v38  ;;  %v1769_v47 = vld [vmem:[#allocation11 + $0x48] sm:$0xff]   ;;  %v1026_v50 = vunpack.c.l.bf16 %v1025_v45  ;;  %v1028_v34 = vunpack.c.l.bf16 %v1027_v46  ;;  %v1771_v53 = vld [vmem:[#allocation11 + $0x40] sm:$0xff]  }
 0x265   : > { %1587 = vmatpush3.bf16.msra.mxu0 %v1760_v30  ;;  %v1029_v49 = vld [vmem:[#allocation2] sm:$0xf]  ;;  %v1770_v52 = vld [vmem:[#allocation11 + $0x8] sm:$0xff]   ;;  %v1772_v57 = vld [vmem:[#allocation11] sm:$0xff]  }
 0x266   : > { %1588 = vmatprep.subr.bf16.mxu0 %v1761_v31  ;;  %v1040_v48 = vcombine.low %v1035_v42, %v1039_v43 }
 0x268   : > { %v1047_v51 = vrot.slane %v1040_v48, %v2381_v19 }
 0x269   : > { %1589 = vmatpush3.bf16.msra.mxu0 %v1762_v32 }
 0x26a   : > { %1590 = vmatprep.subr.bf16.mxu0 %v1763_v33  ;;  %v1049_v54 = vadd.f32 %v1047_v51, %v1029_v49 }
 0x26c   : > { %v1050_v55 = vmul.f32 %v1049_v54, %v1026_v50  ;;  %v1057_v56 = vmul.f32 %v1049_v54, %v1028_v34 }
 0x26d   : > { %1591 = vmatpush3.bf16.msra.mxu0 %v1764_v35 }
 0x26e   : > { %1592 = vmatprep.subr.bf16.mxu0 %v1765_v36  ;;  %v1513_v58 = vmul.f32 -1.442695, %v1050_v55  ;;  %v1514_v59 = vmul.f32 -1.442695, %v1057_v56 }
 0x270   : > { %1773 = vpow2.f32 %v1513_v58 }
 0x271   : > { %1593 = vmatpush3.bf16.msra.mxu0 %v1766_v39  ;;  %1775 = vpow2.f32 %v1514_v59 }
 0x272   : > { %1594 = vmatprep.subr.bf16.mxu0 %v1767_v40 }
 0x275   : > { %1595 = vmatpush3.bf16.msra.mxu0 %v1768_v44 }
 0x276   : > { %1596 = vmatprep.subr.bf16.mxu0 %v1769_v47 }
 0x279   : > { %1597 = vmatpush3.bf16.msra.mxu0 %v1770_v52 }
 0x27a   : > { %1598 = vmatprep.subr.bf16.mxu0 %v1771_v53 }
 0x27d   : > { %1599 = vmatpush3.bf16.msra.mxu0 %v1772_v57  ;;  %v1774_v60 = vpop.eup %1773 }
 0x27e   : > { %v1776_v61 = vpop.eup %1775  ;;  %v1054_v62 = vadd.f32 1.0, %v1774_v60 }
 0x27f   : > { %v1061_v63 = vadd.f32 1.0, %v1776_v61 }
 0x280   : > { %1777 = vrcp.f32 %v1054_v62 }
 0x281   : > { %1779 = vrcp.f32 %v1061_v63 }
 0x28d   : > { %v1778_v0 = vpop.eup %1777 }
 0x28e   : > { %v1780_v1 = vpop.eup %1779  ;;  %v1064_v2 = vadd.f32 1.0, %v1778_v0 }
 0x28f   : > { %v1066_v3 = vadd.f32 1.0, %v1780_v1 }
 0x290   : > { %v1065_v4 = vmul.f32 %v1064_v2, %v1026_v50  ;;  %v1069_v5 = vmul.f32 %v1064_v2, %v1028_v34 }
 0x291   : > { %v1067_v6 = vmul.f32 %v1066_v3, %v1026_v50  ;;  %v1068_v7 = vmul.f32 %v1066_v3, %v1028_v34 }
 0x292   : > { %v1077_v8 = vrot.slane %v1065_v4, %v2381_v19  ;;  %v1105_v9 = vcombine.low %v1069_v5, %v1069_v5 }
 0x293   : > { %v1082_v10 = vcombine.low %v1067_v6, %v1067_v6  ;;  %v1100_v11 = vrot.slane %v1068_v7, %v2381_v19 }
 0x294   : > { %v1112_v12 = vrot.slane %v1105_v9, %v2381_v19  ;;  %v1078_v13 = vcombine.high %v1077_v8, %v1077_v8 }
 0x295   : > { %v1089_v14 = vrot.slane %v1082_v10, %v2381_v19  ;;  %v1101_v15 = vcombine.low %v1100_v11, %v1100_v11  ;;  %v1515_v19 = vld [vmem:[%s2431_s8] ss:$0 sm:$0xff] }
 0x296   : > { %v1113_v16 = vcombine.low %v1112_v12, %v1112_v12 }
 0x297   : > { %v1090_v17 = vcombine.high %v1089_v14, %v1089_v14  ;;  %v1117_v18 = vsel %vm1116_vm0, %v1077_v8, %v1089_v14 }
 0x298   : > { %v1120_v20 = vsel %vm1119_vm1, %v1117_v18, %v1101_v15 }
 0x299   : > { %v1118_v21 = vsel %vm1116_vm0, %v1078_v13, %v1090_v17  ;;  %v1123_v22 = vsel %vm1122_vm2, %v1120_v20, %v1113_v16 }
 0x29a   : > { %v1121_v23 = vsel %vm1119_vm1, %v1118_v21, %v1100_v11  ;;  %v1125_v25 = vpack.c.bf16 %v1123_v22, %v1123_v22 }
 0x29b   : > { %v1124_v24 = vsel %vm1122_vm2, %v1121_v23, %v1112_v12 }
 0x29c   : > { %v1126_v26 = vpack.c.bf16 %v1124_v24, %v1124_v24 }
 0x29e   : > { %1294 = vmatprep.mubr.bf16.mxu0 %v1126_v26 }
 0x29f   : > { %1295 = vmatmul.mubr.bf16.vlgmr.msra.gmra.mxu0 %v1125_v25 }
 0x35f   : > { %v1600_v27 = vpop.f32.mrf.mxu0 }
 0x361   : > { %v1601_v28 = vpop.f32.mrf.mxu0 }
 0x362   : > { %v1602_v29 = vadd.f32 %v1601_v28, %v1600_v27 }
 0x363   : > { %v1603_v30 = vpop.f32.mrf.mxu0 }
 0x364   : > { %v1297_v31 = vadd.f32 %v1602_v29, %v1515_v19 }
 0x365   : > { %v1604_v32 = vpop.f32.mrf.mxu0 }
 0x366   : > { %1302 = vst [vmem:[#allocation12] sm:$0xff] %v1297_v31 }
 0x367 PF: > { %p1655_p6 = scmp.eq.s32.totalorder %s2103_s13, 1  ;;  %s2033_s26 = smov [#allocation12]  }
 0x368   : > { %s1310_s25 = sshll.u32 %s2033_s26, 4  ;;  %s1311_s25 = int_to_ptr.vmem [resolvable:$true] %s1310_s25 }
 0x369   : > { %s1943_s18 = scalar_lea.vmem %s1311_s25, 128  ;;  %p1950_p4 = scmp.lt.s32.totalorder %s1311_s25, %s1311_s25 }
 0x36a   : > { %p1944_p7 = scmp.ne.s32.totalorder %s1311_s25, %s1943_s18  ;;  %p1951_p2 = scmp.lt.s32.totalorder %s1943_s18, %s1943_s18 }
 0x36c   : > { %p1945_p11 = pnand %p1944_p7, %p1655_p6  ;;  %p1952_p12 = por %p1951_p2, %p1950_p4 }
 0x36e   : > { %p1946_p5 = pneg %p1945_p11 }
 0x370   : > { %p1953_p8 = pnand %p1952_p12, %p1946_p5 }
 0x372   : > { %1956 = shalt.err (!%p1953_p8)
}
 0x373   : > { %1625 = dma.vmem_to_hbm [thread:$0]  (%p1655_p6), %s1311_s25, 128, %s2432_s9, [#allocation5]  }
 0x374   : > { %2000 = dma.done.wait (%p1655_p6), [#allocation5], 128  }
 0x375   : > { %2002 = vsyncadd (%p1655_p6), [#allocation5], 4294967168 }
 0x376 PF: > { %s2472_s29 = sld [smem:[#allocation18_spill]]  ;;  %p19_p0 = scmp.ge.s32.totalorder %s2106_s14, 4  }
 0x377   : > { %s2473_s11 = sld [smem:[#allocation19_spill]]  ;;  %s2474_s30 = smov %s2009_s10 }
 0x378   : > { %s2476_s12 = smov %s2106_s14  ;;  %21 = sbr.rel (!%p19_p0) target bundleno = 7 (0x7), region = 137 }
 0x37c   : > { %s2475_s10 = smov %s2472_s29 }
 0x37d   :  { %1323 = vsyncpa [#allocation4], 1 }
 0x37e   :  { %1325 = vsyncpa [#allocation4 + $0x1], 1 }
 0x37f   :  { %1326 = vsyncpa [#allocation7], 1 }
 0x380   :  { %1327 = vsyncpa [#allocation5], 1 }
 0x381   :  { %1329 = vsyncpa [#allocation5 + $0x1], 1 }

</bundles_post_ra>
